<compile_context>
chip_gen: v5e
topology: v5e:2x2
jax: 0.10.0
libtpu: 0.0.40
codegen_flags: <defaults>
</compile_context>

<pallas_src>
import functools

import jax
import jax.numpy as jnp
from jax.experimental import pallas as pl
from jax.experimental.pallas import tpu as pltpu

GAMMA = 2  # integer exponent -> lowers to multiplies on the VPU


def _ce_partial_sum_kernel(logits_ref, gt_ref, out_ref, *, total_n, tile_n):
    """Per-tile sum of cross-entropy; writes the partial into out block element [0,0,0]."""
    i = pl.program_id(0)

    logits = logits_ref[...].astype(jnp.float32)           # (tile_n, c_pad)
    gt = gt_ref[...]                                        # (tile_n, 1) int32
    tn, c = logits.shape

    # Numerically-stable log-sum-exp per row (one exp + one log per row on the EUP).
    m = jnp.max(logits, axis=-1, keepdims=True)                              # (tn, 1)
    lse = m + jnp.log(jnp.sum(jnp.exp(logits - m), axis=-1, keepdims=True))  # (tn, 1)

    # Fused select-reduce "gather" of logits[r, gt[r]] (no f32 one-hot temporary).
    class_ids = jax.lax.broadcasted_iota(jnp.int32, (tn, c), 1)
    picked = jnp.sum(jnp.where(class_ids == gt, logits, 0.0), axis=-1, keepdims=True)

    ce = lse - picked                                       # (tn, 1) per-sample CE

    # Mask rows past the true batch size (last, possibly partial, tile).
    row_ids = i * tile_n + jax.lax.broadcasted_iota(jnp.int32, (tn, 1), 0)
    ce = jnp.where(row_ids < total_n, ce, 0.0)

    partial = jnp.sum(ce)

    # Lane-dense (8,128) output block: partial at [0,0,0], zeros elsewhere.
    # Single unmasked vector store; the wrapper just sums everything.
    sub = jax.lax.broadcasted_iota(jnp.int32, (1, 8, 128), 1)
    lane = jax.lax.broadcasted_iota(jnp.int32, (1, 8, 128), 2)
    out_ref[...] = jnp.where((sub == 0) & (lane == 0), partial, 0.0)


def _choose_tile_n(n, c_pad, itemsize, cap):
    # Target ~4 MiB per logits tile; BlockSpec double-buffers it (~8 MiB total),
    # which fits every chip's default scoped VMEM (16 MiB v5e, 32 MiB v6e/v7x).
    target_bytes = 4 * 1024 * 1024
    rows = target_bytes // max(1, c_pad * itemsize)
    rows = int(max(8, min(rows, cap)))
    rows -= rows % 8
    rows = max(rows, 8)
    if n <= rows:
        return n          # single tile: block == full batch dim (always legal)
    return rows           # multiple of 8 -> legal sublane tiling


def focal_loss(logits, gt, gamma=GAMMA, max_rows_per_tile=2048):
    """logits: (N, C) float (any dtype), gt: (N,) int class ids -> scalar focal loss.

    NOTE: for tiny problems (like the sanity-check shapes below) the kernel is
    pure launch overhead; focal_loss_ref (pure JAX) is the right call there.
    """
    n, c = logits.shape
    gt2 = gt.reshape(n, 1).astype(jnp.int32)

    # Lane-dense class dim: pad to a multiple of 128 with a very negative value so
    # padded lanes never win the max, contribute exp()=0, and never match gt.
    # (No extra HBM pass when C is already a multiple of 128.)
    c_pad = ((c + 127) // 128) * 128
    if c_pad != c:
        logits = jnp.pad(logits, ((0, 0), (0, c_pad - c)), constant_values=-1e30)

    itemsize = jnp.dtype(logits.dtype).itemsize
    tile_n = _choose_tile_n(n, c_pad, itemsize, max_rows_per_tile)
    num_tiles = -(-n // tile_n)  # ceil div

    kernel = functools.partial(_ce_partial_sum_kernel, total_n=n, tile_n=tile_n)

    partials = pl.pallas_call(
        kernel,
        out_shape=jax.ShapeDtypeStruct((num_tiles, 8, 128), jnp.float32),
        grid=(num_tiles,),
        in_specs=[
            pl.BlockSpec((tile_n, c_pad), lambda i: (i, 0)),
            pl.BlockSpec((tile_n, 1), lambda i: (i, 0)),
        ],
        out_specs=pl.BlockSpec((1, 8, 128), lambda i: (i, 0, 0)),
        compiler_params=pltpu.CompilerParams(
            dimension_semantics=("parallel",),  # batch tiles independent -> v7x 2-TC sharding
        ),
    )(logits, gt2)

    # Cheap scalar finalize in the wrapper (keeps the kernel grid axis parallel).
    logp = jnp.sum(partials) / jnp.float32(n)   # divide by the TRUE global N
    p = jnp.exp(-logp)
    return (1.0 - p) ** gamma * logp


def focal_loss_ref(logits, gt, gamma=GAMMA):
    # Pure-JAX reference for sanity checking.
    logits = logits.astype(jnp.float32)
    logz = jax.nn.logsumexp(logits, axis=-1)
    picked = jnp.take_along_axis(logits, gt[:, None], axis=-1)[:, 0]
    logp = jnp.mean(logz - picked)
    p = jnp.exp(-logp)
    return (1.0 - p) ** gamma * logp


if __name__ == "__main__":
    key = jax.random.PRNGKey(0)
    k1, k2, k3, k4 = jax.random.split(key, 4)

    # Small shapes consistent with the module: batch=8 samples, 16 classes.
    N, C = 8, 16
    logits = jax.random.normal(k1, (N, C), dtype=jnp.float32)
    gt = jax.random.randint(k2, (N,), 0, C, dtype=jnp.int32)

    out = focal_loss(logits, gt)
    jax.block_until_ready(out)
    ref = focal_loss_ref(logits, gt)
    assert jnp.allclose(out, ref, rtol=1e-5, atol=1e-5), (out, ref)

    # Multi-tile grid with a partial last tile (exercises the row mask + parallel grid).
    N2, C2 = 20, 16
    logits2 = jax.random.normal(k3, (N2, C2), dtype=jnp.float32)
    gt2 = jax.random.randint(k4, (N2,), 0, C2, dtype=jnp.int32)
    out2 = focal_loss(logits2, gt2, max_rows_per_tile=8)
    jax.block_until_ready(out2)
    ref2 = focal_loss_ref(logits2, gt2)
    assert jnp.allclose(out2, ref2, rtol=1e-5, atol=1e-5), (out2, ref2)

    print("KERNEL_OK")
</pallas_src>

<mosaic_0001>
module attributes {stable_mosaic.version = 11 : i64} {
  func.func @_ce_partial_sum_kernel(%arg0: i32, %arg1: memref<8x128xf32, #tpu.memory_space<vmem>>, %arg2: memref<8x1xi32, #tpu.memory_space<vmem>>, %arg3: memref<1x8x128xf32, #tpu.memory_space<vmem>>) attributes {dimension_semantics = [#tpu.dimension_semantics<parallel>], iteration_bounds = array<i64: 1>, scalar_prefetch = 0 : i64, scratch_operands = 0 : i64, tpu.core_type = #tpu.core_type<tc>, window_params = [{transform_indices = @transform_0, window_bounds = array<i64: 8, 128>}, {transform_indices = @transform_1, window_bounds = array<i64: 8, 1>}, {transform_indices = @transform_2, window_bounds = array<i64: 1, 8, 128>}]} {
    %c0 = arith.constant 0 : index
    %c0_0 = arith.constant 0 : index
    %0 = vector.load %arg1[%c0, %c0_0] : memref<8x128xf32, #tpu.memory_space<vmem>>, vector<8x128xf32>
    %c0_1 = arith.constant 0 : index
    %c0_2 = arith.constant 0 : index
    %1 = vector.load %arg2[%c0_1, %c0_2] : memref<8x1xi32, #tpu.memory_space<vmem>>, vector<8x1xi32>
    %cst = arith.constant dense<0xFF800000> : vector<8xf32>
    %2 = vector.multi_reduction <maximumf>, %0, %cst [1] : vector<8x128xf32> to vector<8xf32>
    %3 = vector.shape_cast %2 : vector<8xf32> to vector<8x1xf32>
    %4 = vector.broadcast %3 : vector<8x1xf32> to vector<8x128xf32>
    %5 = arith.subf %0, %4 : vector<8x128xf32>
    %6 = math.exp %5 : vector<8x128xf32>
    %cst_3 = arith.constant dense<0.000000e+00> : vector<8xf32>
    %7 = vector.multi_reduction <add>, %6, %cst_3 [1] : vector<8x128xf32> to vector<8xf32>
    %8 = vector.shape_cast %7 : vector<8xf32> to vector<8x1xf32>
    %9 = math.log %8 : vector<8x1xf32>
    %10 = arith.addf %3, %9 : vector<8x1xf32>
    %11 = tpu.iota {dimensions = array<i32: 1>} : vector<8x128xi32>
    %12 = vector.broadcast %1 : vector<8x1xi32> to vector<8x128xi32>
    %13 = arith.cmpi eq, %11, %12 : vector<8x128xi32>
    %cst_4 = arith.constant 0.000000e+00 : f32
    %14 = vector.broadcast %cst_4 : f32 to vector<8x128xf32>
    %15 = arith.select %13, %0, %14 : vector<8x128xi1>, vector<8x128xf32>
    %cst_5 = arith.constant dense<0.000000e+00> : vector<8xf32>
    %16 = vector.multi_reduction <add>, %15, %cst_5 [1] : vector<8x128xf32> to vector<8xf32>
    %17 = vector.shape_cast %16 : vector<8xf32> to vector<8x1xf32>
    %18 = arith.subf %10, %17 : vector<8x1xf32>
    %c8_i32 = arith.constant 8 : i32
    %19 = arith.muli %arg0, %c8_i32 : i32
    %20 = tpu.iota {dimensions = array<i32: 0>} : vector<8x1xi32>
    %21 = vector.broadcast %19 : i32 to vector<8x1xi32>
    %22 = arith.addi %21, %20 : vector<8x1xi32>
    %c8_i32_6 = arith.constant 8 : i32
    %23 = vector.broadcast %c8_i32_6 : i32 to vector<8x1xi32>
    %24 = arith.cmpi slt, %22, %23 : vector<8x1xi32>
    %cst_7 = arith.constant 0.000000e+00 : f32
    %25 = vector.broadcast %cst_7 : f32 to vector<8x1xf32>
    %26 = arith.select %24, %18, %25 : vector<8x1xi1>, vector<8x1xf32>
    %27 = vector.shape_cast %26 : vector<8x1xf32> to vector<1x8x1xf32>
    %cst_8 = arith.constant dense<0.000000e+00> : vector<1xf32>
    %28 = vector.multi_reduction <add>, %27, %cst_8 [1, 2] : vector<1x8x1xf32> to vector<1xf32>
    %29 = vector.shape_cast %28 : vector<1xf32> to vector<1x1x1xf32>
    %30 = vector.extract %29[0, 0, 0] : f32 from vector<1x1x1xf32>
    %31 = tpu.iota {dimensions = array<i32: 1>} : vector<1x8x128xi32>
    %32 = tpu.iota {dimensions = array<i32: 2>} : vector<1x8x128xi32>
    %c0_i32 = arith.constant 0 : i32
    %33 = vector.broadcast %c0_i32 : i32 to vector<1x8x128xi32>
    %34 = arith.cmpi eq, %31, %33 : vector<1x8x128xi32>
    %c0_i32_9 = arith.constant 0 : i32
    %35 = vector.broadcast %c0_i32_9 : i32 to vector<1x8x128xi32>
    %36 = arith.cmpi eq, %32, %35 : vector<1x8x128xi32>
    %37 = arith.andi %34, %36 : vector<1x8x128xi1>
    %cst_10 = arith.constant 0.000000e+00 : f32
    %38 = vector.broadcast %30 : f32 to vector<1x8x128xf32>
    %39 = vector.broadcast %cst_10 : f32 to vector<1x8x128xf32>
    %40 = arith.select %37, %38, %39 : vector<1x8x128xi1>, vector<1x8x128xf32>
    %c0_11 = arith.constant 0 : index
    %c0_12 = arith.constant 0 : index
    %c0_13 = arith.constant 0 : index
    %41 = vector.load %arg3[%c0_11, %c0_12, %c0_13] : memref<1x8x128xf32, #tpu.memory_space<vmem>>, vector<1x8x128xf32>
    tpu.vector_store %arg3[%c0_11, %c0_12, %c0_13], %40 {strides = array<i32>} : memref<1x8x128xf32, #tpu.memory_space<vmem>>, vector<1x8x128xf32>,
    return
  }
  func.func @transform_0(%arg0: i32) -> (i32, i32) {
    %c0_i32 = arith.constant 0 : i32
    %c0_i32_0 = arith.constant 0 : i32
    return %arg0, %c0_i32 : i32, i32
  }
  func.func @transform_1(%arg0: i32) -> (i32, i32) {
    %c0_i32 = arith.constant 0 : i32
    %c0_i32_0 = arith.constant 0 : i32
    return %arg0, %c0_i32 : i32, i32
  }
  func.func @transform_2(%arg0: i32) -> (i32, i32, i32) {
    %c0_i32 = arith.constant 0 : i32
    %c0_i32_0 = arith.constant 0 : i32
    %c0_i32_1 = arith.constant 0 : i32
    return %arg0, %c0_i32, %c0_i32_0 : i32, i32, i32
  }
}

</mosaic_0001>

<bundles_post_ra>
// kernel: tpu_custom_call.1
= control target key start
LH: loop header
LB: loop body
LE: loop exit
PB: predicated region body
PF: predicated region fallthrough
CT: control target
= control target key end

     0   :  { %s135_s0 = inlined_call_operand.vmem [shape: f32[8,128], index: 0, kind: input, shape index: {}]   ;;  %s136_s1 = inlined_call_operand.vmem [shape: s32[8,1], index: 1, kind: input, shape index: {}]   ;;  %s137_s2 = inlined_call_operand.hbm [shape: f32[1,8,128], index: 2, kind: output, shape index: {}]  }
   0x1   :  { %v12_v0 = vld [vmem:[%s135_s0] sm:$0xff] }
   0x2   :  { %7 = vsyncpa [#allocation3], 0  ;;  %14 = vmax.xlane.f32.xlu0 %v12_v0  ;;  %v109_v1 = vmov 0   ;;  %v13_v2 = vld [vmem:[%s136_s1] sm:$0xff]  ;;  %v24_v7 = vlaneseq  ;;  %vm41_vm1 = vcmask 7168   ;;  %s110_s0 = smov [#allocation2]  }
   0x3   :  { %78 = vset.pattern.permute.xlu0 %v109_v1  ;;  %s63_s1 = sshll.u32 %s110_s0, 4  ;;  %s65_s15 = sshll.u32 %s137_s2, 4  ;;  %s64_s1 = int_to_ptr.vmem [resolvable:$true] %s63_s1  ;;  %s66_s15 = int_to_ptr.hbm [resolvable:$true] %s65_s15 }
   0x4   :  { %v25_v8 = vand.u32 127, %v24_v7  ;;  %v36_v25 = vshrl.u32 %v24_v7, 7 }
   0x6   :  { %vm52_vm2 = vcmp.eq.s32.totalorder %v36_v25, 0  ;;  %vm53_vm3 = vcmp.eq.s32.totalorder %v25_v8, 0 }
   0x7   :  { %vm54_vm4 = vmand %vm52_vm2, %vm53_vm3 }
  0x16   :  { %27 = vperm.xlu0 %78, %v13_v2  }
  0x75   :  { %v15_v3 = vpop.xlane.xlu0 %14 }
  0x76   :  { %v16_v4 = vsub.f32 %v12_v0, %v15_v3 }
  0x78   :  { %v17_v5 = vmul.f32 1.442695, %v16_v4 }
  0x7a   :  { %79 = vpow2.f32 %v17_v5 }
  0x80   :  { %v80_v6 = vpop.eup %79 }
  0x81   :  { %19 = vadd.xlane.f32.xlu1 %v80_v6 }
  0x88   :  { %v28_v9 = vpop.permute.xlu0 %27 }
  0x89   :  { %vm29_vm0 = vcmp.eq.s32.totalorder %v25_v8, %v28_v9 }
  0x8a   :  { %v30_v10 = vsel %vm29_vm0, %v12_v0, 0.0 }
  0x8b   :  { %31 = vadd.xlane.f32.xlu1 %v30_v10 }
  0xf4   :  { %v20_v11 = vpop.xlane.xlu1 %19 }
  0xf5   :  { %81 = vlog2.f32 %v20_v11 }
  0xfb   :  { %v82_v12 = vpop.eup %81 }
  0xfc   :  { %v22_v13 = vmul.f32 0.6931472, %v82_v12 }
  0xfe   :  { %v23_v14 = vadd.f32 %v22_v13, %v15_v3  ;;  %v32_v15 = vpop.xlane.xlu1 %31 }
 0x100   :  { %v33_v16 = vsub.f32 %v23_v14, %v32_v15 }
 0x102   :  { %v42_v17 = vsel %vm41_vm1, %v33_v16, 0.0 }
 0x103   :  { %43 = vadd.xlane.f32.xlu2 %v42_v17 }
 0x176   :  { %v44_v18 = vpop.xlane.xlu2 %43 }
 0x177   :  { %v45_v19 = vrot.slane %v44_v18, 4 }
 0x179   :  { %v46_v20 = vadd.f32 %v45_v19, %v44_v18 }
 0x17b   :  { %v47_v21 = vrot.slane %v46_v20, 2 }
 0x17d   :  { %v48_v22 = vadd.f32 %v47_v21, %v46_v20 }
 0x17f   :  { %v49_v23 = vrot.slane %v48_v22, 1 }
 0x181   :  { %v50_v24 = vadd.f32 %v49_v23, %v48_v22 }
 0x183   :  { %74 = vpush %v50_v24 }
 0x1b4   :  { %s75_s16 = spop %74 }
 0x1b5   :  { %v55_v26 = vstv %s75_s16 }
 0x1b6   :  { %v56_v27 = vsel %vm54_vm4, %v55_v26, 0.0 }
 0x1b7   :  { %57 = vst [vmem:[#allocation2] sm:$0xff] %v56_v27 }
 0x1b8   :  { %68 = dma.vmem_to_hbm [thread:$0]  %s64_s1, 128, %s66_s15, [#allocation3]  }
 0x1b9   :  { %107 = dma.done.wait [#allocation3], 128  }
 0x1ba   :  { %108 = vsyncadd [#allocation3], 4294967168 }
 0x1bb   :  { %73 = vsyncpa [#allocation3], 1 }

</bundles_post_ra>
